<compile_context>
chip_gen: v5e
topology: v5e:2x2
jax: 0.10.0
libtpu: 0.0.40
codegen_flags: <defaults>
</compile_context>

<pallas_src>
import jax
import jax.numpy as jnp
from jax.experimental import pallas as pl
from jax.experimental.pallas import tpu as pltpu


def vgae_kernel(A_ref, X_ref, W_ref, sc_ref, B_ref):
    # W_ref rows: [0:din]        -> W1 = [w1_self | w1_nb]   (din x 2*dh)
    #             [din:din+dh]   -> W2 = [w2_self | w2_nb]   (dh  x 2*dh)
    #             [din+dh]       -> b1 (first dh cols)
    #             [din+dh+1]     -> b2 (first dh cols)
    din = X_ref.shape[1]
    dh = W_ref.shape[1] // 2

    A = A_ref[...]
    X = X_ref[...]

    W1 = W_ref[0:din, :]
    W2 = W_ref[din:din + dh, :]
    b1 = W_ref[din + dh:din + dh + 1, 0:dh]
    b2 = W_ref[din + dh + 1:din + dh + 2, 0:dh]

    # ---- GCN layer 1: relu( X@W_self + b + A@(X@W_nb) ), one fused matmul ----
    # TODO(synk): pytorch_graph_edit_networks.GCN source is not included; we use
    # the standard GEN formulation (self transform with bias + adjacency-
    # aggregated neighbor transform without bias).
    H = jnp.dot(X, W1, preferred_element_type=jnp.float32)          # [m, 2*dh]
    X = jnp.maximum(
        H[:, :dh] + b1 +
        jnp.dot(A, H[:, dh:], preferred_element_type=jnp.float32), 0.0)

    # ---- GCN layer 2 ----
    H = jnp.dot(X, W2, preferred_element_type=jnp.float32)          # [m, 2*dh]
    X = jnp.maximum(
        H[:, :dh] + b2 +
        jnp.dot(A, H[:, dh:], preferred_element_type=jnp.float32), 0.0)

    # NOTE: z = enc_(X)[:, :dim_vae] is computed but never used by the reference
    # forward, so the encoder matmul is elided here.

    # ---- B = bias_(X X^T); zero diagonal; threshold at 0.001 — fused epilogue ----
    bw = sc_ref[0]
    bb = sc_ref[1]
    # Fold the scalar weight into one operand: (bw*X) @ X^T == bw * (X @ X^T).
    S = jax.lax.dot_general(X * bw, X,
                            dimension_numbers=(((1,), (1,)), ((), ())),
                            preferred_element_type=jnp.float32)      # [m, m]
    m = B_ref.shape[0]
    rows = jax.lax.broadcasted_iota(jnp.int32, (m, m), 0)
    cols = jax.lax.broadcasted_iota(jnp.int32, (m, m), 1)
    keep = (S > (0.001 - bb)) & (rows != cols)
    B_ref[...] = jnp.where(keep, 1.0, 0.0).astype(B_ref.dtype)


def pack_params(params):
    """Pack all GCN weights/biases into one VMEM slab + one SMEM scalar vector."""
    dim_hid = params["w1_self"].shape[1]
    w1 = jnp.concatenate([params["w1_self"], params["w1_nb"]], axis=1)   # [din, 2dh]
    w2 = jnp.concatenate([params["w2_self"], params["w2_nb"]], axis=1)   # [dh,  2dh]
    b1 = jnp.pad(params["b1"], ((0, 0), (0, dim_hid)))                   # [1, 2dh]
    b2 = jnp.pad(params["b2"], ((0, 0), (0, dim_hid)))                   # [1, 2dh]
    w_slab = jnp.concatenate([w1, w2, b1, b2], axis=0).astype(jnp.float32)
    scalars = jnp.concatenate([params["bias_w"].reshape(-1),
                               params["bias_b"].reshape(-1)]).astype(jnp.float32)
    return w_slab, scalars


def vgae_forward(A, X, params):
    m = A.shape[0]
    w_slab, scalars = pack_params(params)
    vmem = pl.BlockSpec(memory_space=pltpu.MemorySpace.VMEM)
    smem = pl.BlockSpec(memory_space=pltpu.MemorySpace.SMEM)
    return pl.pallas_call(
        vgae_kernel,
        out_shape=jax.ShapeDtypeStruct((m, m), jnp.float32),
        in_specs=[vmem, vmem, vmem, smem],
        out_specs=vmem,
    )(A, X, w_slab, scalars)


def init_params(key, dim_in, dim_hid, dim_vae=None):
    if dim_vae is None:
        dim_vae = dim_hid
    ks = jax.random.split(key, 8)
    scale = 0.2
    # weights are stored already transposed to [in, out]
    return {
        "w1_self": scale * jax.random.normal(ks[0], (dim_in, dim_hid), jnp.float32),
        "w1_nb":   scale * jax.random.normal(ks[1], (dim_in, dim_hid), jnp.float32),
        "b1":      scale * jax.random.normal(ks[2], (1, dim_hid), jnp.float32),
        "w2_self": scale * jax.random.normal(ks[3], (dim_hid, dim_hid), jnp.float32),
        "w2_nb":   scale * jax.random.normal(ks[4], (dim_hid, dim_hid), jnp.float32),
        "b2":      scale * jax.random.normal(ks[5], (1, dim_hid), jnp.float32),
        # enc_ params exist on the module but its output is unused by forward().
        "w_enc":   scale * jax.random.normal(ks[6], (dim_hid, 2 * dim_vae), jnp.float32),
        "b_enc":   scale * jax.random.normal(ks[7], (1, 2 * dim_vae), jnp.float32),
        # the Linear(1,1) "bias_" layer -> two scalars (kept in SMEM)
        "bias_w":  jnp.array([[0.75]], dtype=jnp.float32),
        "bias_b":  jnp.array([[-0.10]], dtype=jnp.float32),
    }


def vgae_reference(A, X, params):
    """Pure-JAX reference of the same forward, for a correctness check."""
    X1 = jnp.maximum(X @ params["w1_self"] + params["b1"]
                     + A @ (X @ params["w1_nb"]), 0.0)
    X2 = jnp.maximum(X1 @ params["w2_self"] + params["b2"]
                     + A @ (X1 @ params["w2_nb"]), 0.0)
    S = X2 @ X2.T
    Baff = S * params["bias_w"][0, 0] + params["bias_b"][0, 0]
    Baff = Baff - jnp.diag(jnp.diag(Baff))
    return jnp.where(Baff > 0.001, 1.0, 0.0), Baff


if __name__ == "__main__":
    m = 16          # number of graph nodes
    dim_in = 8      # input node-feature dimensionality
    dim_hid = 32    # hidden dim of both GCN layers (num_layers = 2)

    key = jax.random.PRNGKey(0)
    k_a, k_x, k_p = jax.random.split(key, 3)

    # random symmetric binary adjacency with zero diagonal
    A_rand = jax.random.uniform(k_a, (m, m))
    A = (A_rand + A_rand.T > 1.0).astype(jnp.float32)
    A = A * (1.0 - jnp.eye(m, dtype=jnp.float32))

    X = 0.5 * jax.random.normal(k_x, (m, dim_in), dtype=jnp.float32)

    params = init_params(k_p, dim_in, dim_hid)

    B = vgae_forward(A, X, params)
    jax.block_until_ready(B)

    assert B.shape == (m, m)
    # output must be strictly binary with a zero diagonal
    assert bool(jnp.all((B == 0.0) | (B == 1.0)))
    assert bool(jnp.all(jnp.diag(B) == 0.0))

    # match the pure-JAX reference (ignore entries sitting right on the threshold)
    B_exp, B_aff = vgae_reference(A, X, params)
    near_thr = jnp.abs(B_aff - 0.001) < 1e-4
    assert bool(jnp.all((B == B_exp) | near_thr))

    print("KERNEL_OK")
</pallas_src>

<mosaic_0001>
module attributes {stable_mosaic.version = 11 : i64} {
  func.func @vgae_kernel(%arg0: memref<16x16xf32, #tpu.memory_space<vmem>>, %arg1: memref<16x8xf32, #tpu.memory_space<vmem>>, %arg2: memref<42x64xf32, #tpu.memory_space<vmem>>, %arg3: memref<2xf32, #tpu.memory_space<smem>>, %arg4: memref<16x16xf32, #tpu.memory_space<vmem>>) attributes {dimension_semantics = [], scalar_prefetch = 0 : i64, scratch_operands = 0 : i64, tpu.core_type = #tpu.core_type<tc>} {
    %c0 = arith.constant 0 : index
    %c0_0 = arith.constant 0 : index
    %0 = vector.load %arg0[%c0, %c0_0] : memref<16x16xf32, #tpu.memory_space<vmem>>, vector<16x16xf32>
    %c0_1 = arith.constant 0 : index
    %c0_2 = arith.constant 0 : index
    %1 = vector.load %arg1[%c0_1, %c0_2] : memref<16x8xf32, #tpu.memory_space<vmem>>, vector<16x8xf32>
    %c0_3 = arith.constant 0 : index
    %c0_4 = arith.constant 0 : index
    %2 = vector.load %arg2[%c0_3, %c0_4] : memref<42x64xf32, #tpu.memory_space<vmem>>, vector<8x64xf32>
    %c8 = arith.constant 8 : index
    %c0_5 = arith.constant 0 : index
    %3 = vector.load %arg2[%c8, %c0_5] : memref<42x64xf32, #tpu.memory_space<vmem>>, vector<32x64xf32>
    %c40 = arith.constant 40 : index
    %c0_6 = arith.constant 0 : index
    %4 = vector.load %arg2[%c40, %c0_6] : memref<42x64xf32, #tpu.memory_space<vmem>>, vector<1x32xf32>
    %c41 = arith.constant 41 : index
    %c0_7 = arith.constant 0 : index
    %5 = vector.load %arg2[%c41, %c0_7] : memref<42x64xf32, #tpu.memory_space<vmem>>, vector<1x32xf32>
    %cst = arith.constant dense<0.000000e+00> : vector<16x64xf32>
    %6 = tpu.matmul %1, %2, %cst {dimension_numbers = #tpu.dot_dimension_numbers<[1], [0], [0], [1], [0, 0, 1, 1], [], []>} : vector<16x8xf32>, vector<8x64xf32>, vector<16x64xf32> -> vector<16x64xf32>
    %7 = vector.extract_strided_slice %6 {offsets = [0, 0], sizes = [16, 32], strides = [1, 1]} : vector<16x64xf32> to vector<16x32xf32>
    %8 = vector.broadcast %4 : vector<1x32xf32> to vector<16x32xf32>
    %9 = arith.addf %7, %8 : vector<16x32xf32>
    %10 = vector.extract_strided_slice %6 {offsets = [0, 32], sizes = [16, 32], strides = [1, 1]} : vector<16x64xf32> to vector<16x32xf32>
    %cst_8 = arith.constant dense<0.000000e+00> : vector<16x32xf32>
    %11 = tpu.matmul %0, %10, %cst_8 {dimension_numbers = #tpu.dot_dimension_numbers<[1], [0], [0], [1], [0, 0, 1, 1], [], []>} : vector<16x16xf32>, vector<16x32xf32>, vector<16x32xf32> -> vector<16x32xf32>
    %12 = arith.addf %9, %11 : vector<16x32xf32>
    %cst_9 = arith.constant 0.000000e+00 : f32
    %13 = vector.broadcast %cst_9 : f32 to vector<16x32xf32>
    %14 = arith.maximumf %12, %13 : vector<16x32xf32>
    %cst_10 = arith.constant dense<0.000000e+00> : vector<16x64xf32>
    %15 = tpu.matmul %14, %3, %cst_10 {dimension_numbers = #tpu.dot_dimension_numbers<[1], [0], [0], [1], [0, 0, 1, 1], [], []>} : vector<16x32xf32>, vector<32x64xf32>, vector<16x64xf32> -> vector<16x64xf32>
    %16 = vector.extract_strided_slice %15 {offsets = [0, 0], sizes = [16, 32], strides = [1, 1]} : vector<16x64xf32> to vector<16x32xf32>
    %17 = vector.broadcast %5 : vector<1x32xf32> to vector<16x32xf32>
    %18 = arith.addf %16, %17 : vector<16x32xf32>
    %19 = vector.extract_strided_slice %15 {offsets = [0, 32], sizes = [16, 32], strides = [1, 1]} : vector<16x64xf32> to vector<16x32xf32>
    %cst_11 = arith.constant dense<0.000000e+00> : vector<16x32xf32>
    %20 = tpu.matmul %0, %19, %cst_11 {dimension_numbers = #tpu.dot_dimension_numbers<[1], [0], [0], [1], [0, 0, 1, 1], [], []>} : vector<16x16xf32>, vector<16x32xf32>, vector<16x32xf32> -> vector<16x32xf32>
    %21 = arith.addf %18, %20 : vector<16x32xf32>
    %cst_12 = arith.constant 0.000000e+00 : f32
    %22 = vector.broadcast %cst_12 : f32 to vector<16x32xf32>
    %23 = arith.maximumf %21, %22 : vector<16x32xf32>
    %c0_13 = arith.constant 0 : index
    %24 = memref.load %arg3[%c0_13] : memref<2xf32, #tpu.memory_space<smem>>
    %c1 = arith.constant 1 : index
    %25 = memref.load %arg3[%c1] : memref<2xf32, #tpu.memory_space<smem>>
    %26 = vector.broadcast %24 : f32 to vector<16x32xf32>
    %27 = arith.mulf %23, %26 : vector<16x32xf32>
    %cst_14 = arith.constant dense<0.000000e+00> : vector<16x16xf32>
    %28 = tpu.matmul %27, %23, %cst_14 {dimension_numbers = #tpu.dot_dimension_numbers<[1], [1], [0], [0], [0, 0, 1, 0], [], []>} : vector<16x32xf32>, vector<16x32xf32>, vector<16x16xf32> -> vector<16x16xf32>
    %29 = tpu.iota {dimensions = array<i32: 0>} : vector<16x16xi32>
    %30 = tpu.iota {dimensions = array<i32: 1>} : vector<16x16xi32>
    %cst_15 = arith.constant 1.000000e-03 : f32
    %31 = arith.subf %cst_15, %25 : f32
    %32 = vector.broadcast %31 : f32 to vector<16x16xf32>
    %33 = arith.cmpf ogt, %28, %32 : vector<16x16xf32>
    %34 = arith.cmpi ne, %29, %30 : vector<16x16xi32>
    %35 = arith.andi %33, %34 : vector<16x16xi1>
    %cst_16 = arith.constant 1.000000e+00 : f32
    %cst_17 = arith.constant 0.000000e+00 : f32
    %36 = vector.broadcast %cst_16 : f32 to vector<16x16xf32>
    %37 = vector.broadcast %cst_17 : f32 to vector<16x16xf32>
    %38 = arith.select %35, %36, %37 : vector<16x16xi1>, vector<16x16xf32>
    %c0_18 = arith.constant 0 : index
    %c0_19 = arith.constant 0 : index
    %39 = vector.load %arg4[%c0_18, %c0_19] : memref<16x16xf32, #tpu.memory_space<vmem>>, vector<16x16xf32>
    tpu.vector_store %arg4[%c0_18, %c0_19], %38 {strides = array<i32>} : memref<16x16xf32, #tpu.memory_space<vmem>>, vector<16x16xf32>,
    return
  }
}

</mosaic_0001>

<bundles_post_ra>
// kernel: tpu_custom_call.1
= control target key start
LH: loop header
LB: loop body
LE: loop exit
PB: predicated region body
PF: predicated region fallthrough
CT: control target
= control target key end

     0   :  { %9 = vsyncpa [#allocation3], 0  ;;  %s450_s0 = inlined_call_operand.vmem [shape: f32[16,16], index: 0, kind: input, shape index: {}]   ;;  %s451_s1 = inlined_call_operand.vmem [shape: f32[16,8], index: 1, kind: input, shape index: {}]   ;;  %s452_s2 = inlined_call_operand.hbm [shape: f32[42,64], index: 2, kind: input, shape index: {}]   ;;  %s453_s3 = inlined_call_operand.vmem [shape: f32[2], index: 3, kind: input, shape index: {}]   ;;  %s454_s4 = inlined_call_operand.hbm [shape: f32[16,16], index: 4, kind: output, shape index: {}]  }
   0x1   :  { %10 = vsyncpa [#allocation5], 0 }
   0x2   :  { %11 = vsyncpa [#allocation4], 0  ;;  %s20_s17 = sshll.u32 %s452_s2, 4  ;;  %s377_s18 = smov [#allocation2]   ;;  %s21_s17 = int_to_ptr.hbm [resolvable:$true] %s20_s17 }
   0x3   :  { %s22_s19 = sshll.u32 %s377_s18, 4  ;;  %s34_s22 = sshll.u32 %s453_s3, 4  ;;  %s23_s19 = int_to_ptr.vmem [resolvable:$true] %s22_s19  ;;  %s35_s22 = int_to_ptr.vmem [resolvable:$true] %s34_s22 }
   0x4   :  { %s378_s23 = smov 128   ;;  %s379_s24 = smov 8  }
   0x5   :  { %28 = dma.hbm_to_vmem [thread:$0]  %s21_s17, 768, %s23_s19, [#allocation3], %s378_s23, %s378_s23, %s379_s24  }
   0x6   :  { %s380_s25 = smov [#allocation6]  }
   0x7   :  { %37 = dma.vmem_to_smem %s35_s22, 16, %s380_s25, [#allocation5]  }
   0x8   :  { %371 = dma.done.wait [#allocation3], 768  }
   0x9   :  { %372 = vsyncadd [#allocation3], 4294966528 }
   0xa   :  { %373 = dma.done.wait [#allocation5], 16  }
   0xb   :  { %374 = vsyncadd [#allocation5], 4294967280 }
   0xc   :  { %46 = sfence }
   0xd   :  { %v51_v0 = vld [vmem:[#allocation2] sm:$0xff]  ;;  %vm58_vm0 = vcmask 64512   ;;  %v50_v2 = vld [vmem:[%s451_s1 + $0x8] sm:$0xff]  ;;  %s381_s28 = smov 96   ;;  %vm99_vm1 = vcmask 130048   ;;  %v54_v12 = vld [vmem:[#allocation2 + $0x18] sm:$0xff]  ;;  %v241_v42 = vlaneseq }
   0xe   :  { %v49_v1 = vld [vmem:[%s451_s1] sm:$0xff]  ;;  %80 = vmatpush.msra.mxu0 %v51_v0  ;;  %291 = vmatpush.msra.mxu1 %v51_v0  ;;  %v48_v11 = vld [vmem:[%s450_s0 + $0x8] sm:$0xff]  ;;  %v53_v13 = vld [vmem:[#allocation2 + $0x10] sm:$0xff]  ;;  %vm133_vm2 = vcmask 261120   ;;  %s286_s6 = sld [smem:[#allocation6 + $0x1]]  ;;  %v382_v47 = vmov 0.0  }
   0xf   :  { %278 = vmatmul.msk.f32.vlgmr.msra.gmra.mxu0 %vm58_vm0, %v49_v1  ;;  %279 = vmatmul.msk.f32.vlgmr.msra.gmra.mxu1 %vm58_vm0, %v50_v2  ;;  %v55_v6 = vld [vmem:[#allocation2 + $0x20] sm:$0xff]  ;;  %v52_v14 = vld [vmem:[#allocation2 + $0x8] sm:$0xff]  ;;  %v242_v43 = vshrl.u32 %v241_v42, 7  ;;  %v245_v44 = vand.u32 127, %v241_v42  ;;  %s383_s8 = smov [#allocation7]   ;;  %s264_s12 = sshll.u32 %s454_s4, 4  ;;  %s265_s12 = int_to_ptr.hbm [resolvable:$true] %s264_s12 }
  0x10   :  { %152 = vmatpush.msra.mxu2 %v55_v6  ;;  %v47_v10 = vld [vmem:[%s450_s0] sm:$0xff]  ;;  %v309_v15 = vld [vmem:[#allocation2 + $0x28] ss:$0 sm:$0xff]  ;;  %v310_v31 = vld [vmem:[#allocation2 + $0x29] ss:$0 sm:$0xff]  ;;  %s201_s0 = sld [smem:[#allocation6]] }
  0x11   :  { %vm250_vm3 = vcmp.ne.s32.totalorder %v242_v43, %v245_v44  ;;  %v243_v49 = vadd.s32 8, %v242_v43  ;;  %s262_s9 = sshll.u32 %s383_s8, 4  ;;  %s263_s9 = int_to_ptr.vmem [resolvable:$true] %s262_s9 }
  0x12   :  { %153 = vmatpush.msra.mxu2 %v54_v12 }
  0x13   :  { %vm251_vm6 = vcmp.ne.s32.totalorder %v243_v49, %v245_v44 }
  0x14   :  { %154 = vmatpush.msra.mxu2 %v53_v13  ;;  %s246_s7 = ssub.f32 0.001, %s286_s6 }
  0x16   :  { %155 = vmatpush.msra.mxu2 %v52_v14  ;;  %v203_v39 = vstv %s201_s0  ;;  %v247_v45 = vstv %s246_s7 }
  0x8c   :  { %v82_v3 = vpop.f32.mrf.mxu0  ;;  %v85_v4 = vpop.f32.mrf.mxu1 }
  0x8d   :  { %v299_v5 = vpack.i.bf16 %v82_v3, %v85_v4  ;;  %v89_v16 = vadd.f32 %v309_v15, %v82_v3  ;;  %v90_v20 = vadd.f32 %v309_v15, %v85_v4 }
  0x8f   :  { %300 = vrot.lane.b32.xlu0 %v299_v5, %s381_s28 }
 0x101   :  { %v301_v7 = vpop.permute.xlu0 %300 }
 0x102   :  { %v302_v8 = vunpack.i.l.bf16 %v301_v7  ;;  %v303_v9 = vunpack.i.h.bf16 %v301_v7 }
 0x104   :  { %120 = vmatpush.msrb.mxu1 %v302_v8 }
 0x106   :  { %121 = vmatpush.msrb.mxu1 %v303_v9 }
 0x107   :  { %280 = vmatmul.msk.f32.vlgmr.msrb.gmra.mxu1 %vm99_vm1, %v47_v10 }
 0x10f   :  { %281 = vmatmul.msk.f32.gmra.mxu1 %vm99_vm1, %v48_v11 }
 0x184   :  { %v123_v17 = vpop.f32.mrf.mxu1 }
 0x185   :  { %v129_v18 = vadd.f32 %v123_v17, %v89_v16 }
 0x187   :  { %v131_v19 = vmax.f32 %v129_v18, 0.0 }
 0x189   :  { %282 = vmatmul.msk.f32.vlgmr.msra.gmra.mxu2 %vm133_vm2, %v131_v19 }
 0x18c   :  { %v126_v21 = vpop.f32.mrf.mxu1 }
 0x18d   :  { %v130_v22 = vadd.f32 %v126_v21, %v90_v20 }
 0x18f   :  { %v132_v23 = vmax.f32 %v130_v22, 0.0 }
 0x191   :  { %283 = vmatmul.msk.f32.gmra.mxu2 %vm133_vm2, %v132_v23 }
 0x20c   :  { %v157_v24 = vpop.f32.mrf.mxu2 }
 0x20d   :  { %v164_v33 = vadd.f32 %v310_v31, %v157_v24 }
 0x214   :  { %v160_v25 = vpop.f32.mrf.mxu2 }
 0x215   :  { %v304_v26 = vpack.i.bf16 %v157_v24, %v160_v25  ;;  %v165_v32 = vadd.f32 %v310_v31, %v160_v25 }
 0x217   :  { %305 = vrot.lane.b32.xlu0 %v304_v26, %s381_s28 }
 0x289   :  { %v306_v27 = vpop.permute.xlu0 %305 }
 0x28a   :  { %v307_v28 = vunpack.i.l.bf16 %v306_v27  ;;  %v308_v29 = vunpack.i.h.bf16 %v306_v27 }
 0x28c   :  { %188 = vmatpush.msra.mxu3 %v307_v28 }
 0x28e   :  { %189 = vmatpush.msra.mxu3 %v308_v29 }
 0x28f   :  { %284 = vmatmul.msk.f32.vlgmr.msra.gmra.mxu3 %vm99_vm1, %v47_v10 }
 0x297   :  { %285 = vmatmul.msk.f32.gmra.mxu3 %vm99_vm1, %v48_v11 }
 0x312   :  { %v191_v30 = vpop.f32.mrf.mxu3 }
 0x313   :  { %v197_v36 = vadd.f32 %v191_v30, %v164_v33 }
 0x315   :  { %v199_v38 = vmax.f32 %v197_v36, 0.0 }
 0x317   :  { %v204_v40 = vmul.f32 %v203_v39, %v199_v38 }
 0x31a   :  { %v194_v34 = vpop.f32.mrf.mxu3 }
 0x31b   :  { %v198_v35 = vadd.f32 %v194_v34, %v165_v32 }
 0x31d   :  { %v200_v37 = vmax.f32 %v198_v35, 0.0 }
 0x31f   :  { %287 = vmatpush.xpose.msk.msrb.mxu0 %vm133_vm2, %v200_v37  ;;  %v205_v41 = vmul.f32 %v203_v39, %v200_v37 }
 0x323   :  { %288 = vmatpush.xpose.msk.msrb.mxu0 %vm133_vm2, %v199_v38 }
 0x326   :  { %289 = vmatmul.msk.f32.vlgmr.msrb.gmra.mxu0 %vm133_vm2, %v204_v40 }
 0x32e   :  { %290 = vmatmul.msk.f32.gmra.mxu0 %vm133_vm2, %v205_v41 }
 0x3a3   :  { %v235_v46 = vpop.f32.mrf.mxu0 }
 0x3a4   :  { %vm248_vm4 = vcmp.gt.f32.partialorder %v235_v46, %v247_v45 }
 0x3a5   :  { %vm252_vm5 = vmand %vm248_vm4, %vm250_vm3 }
 0x3a6   :  { %v254_v48 = vsel %vm252_vm5, 1.0, %v382_v47 }
 0x3a7   :  { %256 = vst.msk [vmem:[#allocation7] sm:$0xff] %vm99_vm1, %v254_v48 }
 0x3ab   :  { %v238_v50 = vpop.f32.mrf.mxu0 }
 0x3ac   :  { %vm249_vm7 = vcmp.gt.f32.partialorder %v238_v50, %v247_v45 }
 0x3ad   :  { %vm253_vm8 = vmand %vm249_vm7, %vm251_vm6 }
 0x3ae   :  { %v255_v51 = vsel %vm253_vm8, 1.0, %v382_v47 }
 0x3af   :  { %257 = vst.msk [vmem:[#allocation7 + $0x8] sm:$0xff] %vm99_vm1, %v255_v51 }
 0x3b0   :  { %270 = dma.vmem_to_hbm [thread:$0]  %s263_s9, 256, %s265_s12, [#allocation4], %s378_s23, %s378_s23, %s379_s24  }
 0x3b1   :  { %375 = dma.done.wait [#allocation4], 256  }
 0x3b2   :  { %376 = vsyncadd [#allocation4], 4294967040 }
 0x3b3   :  { %275 = vsyncpa [#allocation3], 1 }
 0x3b4   :  { %276 = vsyncpa [#allocation4], 1 }
 0x3b5   :  { %277 = vsyncpa [#allocation5], 1 }

</bundles_post_ra>
